<compile_context>
chip_gen: v7x
topology: tpu7x:2x2x1
jax: 0.10.0
libtpu: 0.0.40
codegen_flags: <defaults>
</compile_context>

<pallas_src>
import jax
import jax.numpy as jnp
from jax.experimental import pallas as pl
from jax.experimental.pallas import tpu as pltpu


def _round_up(x, m):
    return ((x + m - 1) // m) * m


# ---------------------------------------------------------------------------
# Pass 1: 1x1 conv (channel matmul) + per-channel sum / sum-of-squares.
# Blocks: f (1, 2*Cp, tn) [channels x lanes], weight (Cout2, 2*Cp) resident,
# per-batch partial sums (1, Cout2, 128) accumulated across the inner axis.
# ---------------------------------------------------------------------------
def _stats_kernel(f_ref, w_ref, sum_ref, sumsq_ref):
    @pl.when(pl.program_id(1) == 0)
    def _init():
        sum_ref[...] = jnp.zeros_like(sum_ref)
        sumsq_ref[...] = jnp.zeros_like(sumsq_ref)

    y = jnp.dot(w_ref[...], f_ref[0], preferred_element_type=jnp.float32)
    # Column sums on the (otherwise lightly used) MXU: every lane of the
    # (Cout2, 128) partial holds the full per-channel sum for this tile.
    ones = jnp.ones((y.shape[1], 128), dtype=jnp.float32)
    sum_ref[...] += jnp.dot(y, ones, preferred_element_type=jnp.float32)[None]
    sumsq_ref[...] += jnp.dot(y * y, ones, preferred_element_type=jnp.float32)[None]


# ---------------------------------------------------------------------------
# Pass 2: recomputed 1x1 conv (BN scale folded into the weights) + shift + ReLU.
# ---------------------------------------------------------------------------
def _conv_bn_relu_kernel(f_ref, w_ref, shift_ref, o_ref):
    y = jnp.dot(w_ref[...], f_ref[0], preferred_element_type=jnp.float32)
    o_ref[...] = jnp.maximum(y + shift_ref[...], 0.0)[None]


@jax.jit
def fourier_unit_forward(x, conv_w, bn_gamma, bn_beta):
    """FourierUnit forward (groups=1, no spatial scale, no pos-encoding, 2D FFT).

    x:        (B, C_in, H, W) float32   [NCHW, like PyTorch]
    conv_w:   (2*C_out, 2*C_in, 1, 1) float32  [Conv2d weight, bias=False]
    bn_gamma: (2*C_out,) float32
    bn_beta:  (2*C_out,) float32
    returns:  (B, C_out, H, W) float32
    """
    B, C, H, W = x.shape
    Cout2 = conv_w.shape[0]
    Cout = Cout2 // 2
    eps = 1e-5

    # ---- FFT glue (plain XLA) ----------------------------------------------
    ff = jnp.fft.rfft2(x.astype(jnp.float32), norm="ortho")   # (B, C, H, Wf)
    Wf = ff.shape[-1]
    HWf = H * Wf

    # Lane-dense tiling: flattened (h, wf) on lanes, channels on sublanes.
    Cp = max(_round_up(C, 8), 8)                 # padded input channels
    K = 2 * Cp                                   # stacked real|imag channels
    # VMEM-budgeted lane tile (double-buffered f blocks + output blocks).
    per_lane_bytes = 4 * (2 * K + 2 * Cout2)
    tn_cap = max(128, (6 * 1024 * 1024 // per_lane_bytes) // 128 * 128)
    tn = min(1024, tn_cap, _round_up(HWf, 128))
    HWf_p = _round_up(HWf, tn)

    r = jnp.real(ff).reshape(B, C, HWf)
    im = jnp.imag(ff).reshape(B, C, HWf)
    cpad = ((0, 0), (0, Cp - C), (0, 0))
    f = jnp.concatenate([jnp.pad(r, cpad), jnp.pad(im, cpad)], axis=1)
    f = jnp.pad(f, ((0, 0), (0, 0), (0, HWf_p - HWf)))         # (B, 2Cp, HWf_p)

    # Fold the torch real/imag channel interleave into the tiny weight matrix:
    #   input side : my rows are [real c0..cC-1 | imag c0..cC-1]
    #                -> real part uses torch input cols 0,2,4,..., imag cols 1,3,5,...
    #   output side: permute rows so outputs come out as [reals | imags].
    Wm = conv_w.reshape(Cout2, 2 * C)
    q = list(range(0, Cout2, 2)) + list(range(1, Cout2, 2))
    w_r = jnp.pad(Wm[:, 0::2], ((0, 0), (0, Cp - C)))           # (Cout2, Cp)
    w_i = jnp.pad(Wm[:, 1::2], ((0, 0), (0, Cp - C)))
    w_cat = jnp.concatenate([w_r, w_i], axis=1)[q, :]           # (Cout2, 2Cp)
    gamma_p = bn_gamma[jnp.array(q)]
    beta_p = bn_beta[jnp.array(q)]

    grid = (B, HWf_p // tn)

    # ---- Pass 1: BN batch statistics (no y written to HBM) ------------------
    sums, sumsq = pl.pallas_call(
        _stats_kernel,
        out_shape=(
            jax.ShapeDtypeStruct((B, Cout2, 128), jnp.float32),
            jax.ShapeDtypeStruct((B, Cout2, 128), jnp.float32),
        ),
        grid=grid,
        in_specs=[
            pl.BlockSpec((1, K, tn), lambda b, j: (b, 0, j)),
            pl.BlockSpec((Cout2, K), lambda b, j: (0, 0)),
        ],
        out_specs=(
            pl.BlockSpec((1, Cout2, 128), lambda b, j: (b, 0, 0)),
            pl.BlockSpec((1, Cout2, 128), lambda b, j: (b, 0, 0)),
        ),
        compiler_params=pltpu.CompilerParams(
            dimension_semantics=("parallel", "arbitrary")),
    )(f, w_cat)

    # Tiny per-channel scalars (padded channels/lanes contributed exactly zero).
    n = jnp.float32(B * HWf)
    s = jnp.sum(sums[:, :, 0], axis=0)                # (Cout2,)
    ss = jnp.sum(sumsq[:, :, 0], axis=0)
    mean = s / n
    var = ss / n - mean * mean                        # biased (torch BN training)
    scale = gamma_p / jnp.sqrt(var + eps)
    shift = (beta_p - mean * scale)[:, None]          # (Cout2, 1)
    w_s = w_cat * scale[:, None]                      # fold BN scale into weights

    # ---- Pass 2: fused conv + BN shift + ReLU (lane-dense output) -----------
    z = pl.pallas_call(
        _conv_bn_relu_kernel,
        out_shape=jax.ShapeDtypeStruct((B, Cout2, HWf_p), jnp.float32),
        grid=grid,
        in_specs=[
            pl.BlockSpec((1, K, tn), lambda b, j: (b, 0, j)),
            pl.BlockSpec((Cout2, K), lambda b, j: (0, 0)),
            pl.BlockSpec((Cout2, 1), lambda b, j: (0, 0)),
        ],
        out_specs=pl.BlockSpec((1, Cout2, tn), lambda b, j: (b, 0, j)),
        compiler_params=pltpu.CompilerParams(
            dimension_semantics=("parallel", "parallel")),
    )(f, w_s, shift)

    # ---- back to complex + inverse FFT (rows already [reals | imags]) -------
    z = z[:, :, :HWf].reshape(B, Cout2, H, Wf)
    zc = jax.lax.complex(z[:, :Cout], z[:, Cout:])    # (B, Cout, H, Wf)
    out = jnp.fft.irfft2(zc, s=(H, W), norm="ortho")  # (B, Cout, H, W)
    return out.astype(jnp.float32)


# ---------------------------------------------------------------------------
# Pure-JAX reference mirroring the PyTorch module (training-mode BatchNorm).
# ---------------------------------------------------------------------------
def _reference(x, conv_w, gamma, beta, eps=1e-5):
    B, C, H, W = x.shape
    Cout2 = conv_w.shape[0]
    Cout = Cout2 // 2
    ff = jnp.fft.rfft2(x, norm="ortho")
    f = jnp.stack([jnp.real(ff), jnp.imag(ff)], axis=-1)       # (B,C,H,Wf,2)
    f = jnp.transpose(f, (0, 1, 4, 2, 3)).reshape(B, 2 * C, H, -1)
    Wm = conv_w.reshape(Cout2, 2 * C)
    y = jnp.einsum("oc,bchw->bohw", Wm, f)
    mean = y.mean(axis=(0, 2, 3), keepdims=True)
    var = y.var(axis=(0, 2, 3), keepdims=True)                 # biased
    yn = (y - mean) / jnp.sqrt(var + eps)
    yn = yn * gamma[None, :, None, None] + beta[None, :, None, None]
    yn = jnp.maximum(yn, 0.0)
    yn = yn.reshape(B, Cout, 2, H, -1)
    yc = jax.lax.complex(yn[:, :, 0], yn[:, :, 1])
    return jnp.fft.irfft2(yc, s=(H, W), norm="ortho")


if __name__ == "__main__":
    B, Cin, Cout, H, W = 2, 4, 4, 16, 16

    key = jax.random.PRNGKey(0)
    kx, kw, kg, kb = jax.random.split(key, 4)

    x = jax.random.normal(kx, (B, Cin, H, W), dtype=jnp.float32)
    conv_w = jax.random.normal(kw, (2 * Cout, 2 * Cin, 1, 1), dtype=jnp.float32) * 0.1
    bn_gamma = 1.0 + 0.1 * jax.random.normal(kg, (2 * Cout,), dtype=jnp.float32)
    bn_beta = 0.1 * jax.random.normal(kb, (2 * Cout,), dtype=jnp.float32)

    out = fourier_unit_forward(x, conv_w, bn_gamma, bn_beta)
    jax.block_until_ready(out)
    assert out.shape == (B, Cout, H, W), out.shape

    ref = _reference(x, conv_w, bn_gamma, bn_beta)
    jax.block_until_ready(ref)
    assert jnp.allclose(out, ref, rtol=2e-3, atol=2e-3), float(jnp.max(jnp.abs(out - ref)))

    print("KERNEL_OK")
</pallas_src>

<mosaic_0001>
module attributes {stable_mosaic.version = 11 : i64} {
  func.func @_stats_kernel(%arg0: i32, %arg1: i32, %arg2: memref<1x16x256xf32, #tpu.memory_space<vmem>>, %arg3: memref<8x16xf32, #tpu.memory_space<vmem>>, %arg4: memref<1x8x128xf32, #tpu.memory_space<vmem>>, %arg5: memref<1x8x128xf32, #tpu.memory_space<vmem>>) attributes {dimension_semantics = [#tpu.dimension_semantics<parallel>, #tpu.dimension_semantics<arbitrary>], iteration_bounds = array<i64: 2, 1>, scalar_prefetch = 0 : i64, scratch_operands = 0 : i64, tpu.core_type = #tpu.core_type<tc>, window_params = [{transform_indices = @transform_0, window_bounds = array<i64: 1, 16, 256>}, {pipeline_mode = #tpu.pipeline_mode<synchronous>, transform_indices = @transform_1, window_bounds = array<i64: 8, 16>}, {transform_indices = @transform_2, window_bounds = array<i64: 1, 8, 128>}, {transform_indices = @transform_3, window_bounds = array<i64: 1, 8, 128>}]} {
    %c0_i32 = arith.constant 0 : i32
    %0 = arith.cmpi eq, %arg1, %c0_i32 : i32
    %1 = arith.extui %0 : i1 to i32
    %c0_i32_0 = arith.constant 0 : i32
    %2 = arith.cmpi ne, %1, %c0_i32_0 : i32
    scf.if %2 {
      %cst_20 = arith.constant 0.000000e+00 : f32
      %19 = vector.broadcast %cst_20 : f32 to vector<1x8x128xf32>
      %c0_21 = arith.constant 0 : index
      %c0_22 = arith.constant 0 : index
      %c0_23 = arith.constant 0 : index
      %20 = vector.load %arg4[%c0_21, %c0_22, %c0_23] : memref<1x8x128xf32, #tpu.memory_space<vmem>>, vector<1x8x128xf32>
      tpu.vector_store %arg4[%c0_21, %c0_22, %c0_23], %19 {strides = array<i32>} : memref<1x8x128xf32, #tpu.memory_space<vmem>>, vector<1x8x128xf32>,
      %cst_24 = arith.constant 0.000000e+00 : f32
      %21 = vector.broadcast %cst_24 : f32 to vector<1x8x128xf32>
      %c0_25 = arith.constant 0 : index
      %c0_26 = arith.constant 0 : index
      %c0_27 = arith.constant 0 : index
      %22 = vector.load %arg5[%c0_25, %c0_26, %c0_27] : memref<1x8x128xf32, #tpu.memory_space<vmem>>, vector<1x8x128xf32>
      tpu.vector_store %arg5[%c0_25, %c0_26, %c0_27], %21 {strides = array<i32>} : memref<1x8x128xf32, #tpu.memory_space<vmem>>, vector<1x8x128xf32>,
    } else {
    }
    %c0 = arith.constant 0 : index
    %c0_1 = arith.constant 0 : index
    %3 = vector.load %arg3[%c0, %c0_1] : memref<8x16xf32, #tpu.memory_space<vmem>>, vector<8x16xf32>
    %c0_2 = arith.constant 0 : index
    %c0_3 = arith.constant 0 : index
    %c0_4 = arith.constant 0 : index
    %4 = vector.load %arg2[%c0_2, %c0_3, %c0_4] : memref<1x16x256xf32, #tpu.memory_space<vmem>>, vector<1x16x256xf32>
    %5 = vector.shape_cast %4 : vector<1x16x256xf32> to vector<16x256xf32>
    %cst = arith.constant dense<0.000000e+00> : vector<8x256xf32>
    %6 = tpu.matmul %3, %5, %cst {dimension_numbers = #tpu.dot_dimension_numbers<[1], [0], [0], [1], [0, 0, 1, 1], [], []>} : vector<8x16xf32>, vector<16x256xf32>, vector<8x256xf32> -> vector<8x256xf32>
    %cst_5 = arith.constant 1.000000e+00 : f32
    %7 = vector.broadcast %cst_5 : f32 to vector<256x128xf32>
    %c0_6 = arith.constant 0 : index
    %c0_7 = arith.constant 0 : index
    %c0_8 = arith.constant 0 : index
    %8 = vector.load %arg4[%c0_6, %c0_7, %c0_8] : memref<1x8x128xf32, #tpu.memory_space<vmem>>, vector<1x8x128xf32>
    %cst_9 = arith.constant dense<0.000000e+00> : vector<8x128xf32>
    %9 = tpu.matmul %6, %7, %cst_9 {dimension_numbers = #tpu.dot_dimension_numbers<[1], [0], [0], [1], [0, 0, 1, 1], [], []>} : vector<8x256xf32>, vector<256x128xf32>, vector<8x128xf32> -> vector<8x128xf32>
    %10 = vector.shape_cast %9 : vector<8x128xf32> to vector<1x8x128xf32>
    %11 = arith.addf %8, %10 : vector<1x8x128xf32>
    %c0_10 = arith.constant 0 : index
    %c0_11 = arith.constant 0 : index
    %c0_12 = arith.constant 0 : index
    %12 = vector.load %arg4[%c0_10, %c0_11, %c0_12] : memref<1x8x128xf32, #tpu.memory_space<vmem>>, vector<1x8x128xf32>
    tpu.vector_store %arg4[%c0_10, %c0_11, %c0_12], %11 {strides = array<i32>} : memref<1x8x128xf32, #tpu.memory_space<vmem>>, vector<1x8x128xf32>,
    %c0_13 = arith.constant 0 : index
    %c0_14 = arith.constant 0 : index
    %c0_15 = arith.constant 0 : index
    %13 = vector.load %arg5[%c0_13, %c0_14, %c0_15] : memref<1x8x128xf32, #tpu.memory_space<vmem>>, vector<1x8x128xf32>
    %14 = arith.mulf %6, %6 : vector<8x256xf32>
    %cst_16 = arith.constant dense<0.000000e+00> : vector<8x128xf32>
    %15 = tpu.matmul %14, %7, %cst_16 {dimension_numbers = #tpu.dot_dimension_numbers<[1], [0], [0], [1], [0, 0, 1, 1], [], []>} : vector<8x256xf32>, vector<256x128xf32>, vector<8x128xf32> -> vector<8x128xf32>
    %16 = vector.shape_cast %15 : vector<8x128xf32> to vector<1x8x128xf32>
    %17 = arith.addf %13, %16 : vector<1x8x128xf32>
    %c0_17 = arith.constant 0 : index
    %c0_18 = arith.constant 0 : index
    %c0_19 = arith.constant 0 : index
    %18 = vector.load %arg5[%c0_17, %c0_18, %c0_19] : memref<1x8x128xf32, #tpu.memory_space<vmem>>, vector<1x8x128xf32>
    tpu.vector_store %arg5[%c0_17, %c0_18, %c0_19], %17 {strides = array<i32>} : memref<1x8x128xf32, #tpu.memory_space<vmem>>, vector<1x8x128xf32>,
    return
  }
  func.func @transform_0(%arg0: i32, %arg1: i32) -> (i32, i32, i32) {
    %c0_i32 = arith.constant 0 : i32
    %c0_i32_0 = arith.constant 0 : i32
    return %arg0, %c0_i32, %arg1 : i32, i32, i32
  }
  func.func @transform_1(%arg0: i32, %arg1: i32) -> (i32, i32) {
    %c0_i32 = arith.constant 0 : i32
    %c0_i32_0 = arith.constant 0 : i32
    %c0_i32_1 = arith.constant 0 : i32
    return %c0_i32, %c0_i32_0 : i32, i32
  }
  func.func @transform_2(%arg0: i32, %arg1: i32) -> (i32, i32, i32) {
    %c0_i32 = arith.constant 0 : i32
    %c0_i32_0 = arith.constant 0 : i32
    %c0_i32_1 = arith.constant 0 : i32
    return %arg0, %c0_i32, %c0_i32_0 : i32, i32, i32
  }
  func.func @transform_3(%arg0: i32, %arg1: i32) -> (i32, i32, i32) {
    %c0_i32 = arith.constant 0 : i32
    %c0_i32_0 = arith.constant 0 : i32
    %c0_i32_1 = arith.constant 0 : i32
    return %arg0, %c0_i32, %c0_i32_0 : i32, i32, i32
  }
}

module attributes {stable_mosaic.version = 11 : i64} {
  func.func @_conv_bn_relu_kernel(%arg0: i32, %arg1: i32, %arg2: memref<1x16x256xf32, #tpu.memory_space<vmem>>, %arg3: memref<8x16xf32, #tpu.memory_space<vmem>>, %arg4: memref<8x1xf32, #tpu.memory_space<vmem>>, %arg5: memref<1x8x256xf32, #tpu.memory_space<vmem>>) attributes {dimension_semantics = [#tpu.dimension_semantics<parallel>, #tpu.dimension_semantics<parallel>], iteration_bounds = array<i64: 2, 1>, scalar_prefetch = 0 : i64, scratch_operands = 0 : i64, tpu.core_type = #tpu.core_type<tc>, window_params = [{transform_indices = @transform_0, window_bounds = array<i64: 1, 16, 256>}, {pipeline_mode = #tpu.pipeline_mode<synchronous>, transform_indices = @transform_1, window_bounds = array<i64: 8, 16>}, {pipeline_mode = #tpu.pipeline_mode<synchronous>, transform_indices = @transform_2, window_bounds = array<i64: 8, 1>}, {transform_indices = @transform_3, window_bounds = array<i64: 1, 8, 256>}]} {
    %c0 = arith.constant 0 : index
    %c0_0 = arith.constant 0 : index
    %0 = vector.load %arg3[%c0, %c0_0] : memref<8x16xf32, #tpu.memory_space<vmem>>, vector<8x16xf32>
    %c0_1 = arith.constant 0 : index
    %c0_2 = arith.constant 0 : index
    %c0_3 = arith.constant 0 : index
    %1 = vector.load %arg2[%c0_1, %c0_2, %c0_3] : memref<1x16x256xf32, #tpu.memory_space<vmem>>, vector<1x16x256xf32>
    %2 = vector.shape_cast %1 : vector<1x16x256xf32> to vector<16x256xf32>
    %cst = arith.constant dense<0.000000e+00> : vector<8x256xf32>
    %3 = tpu.matmul %0, %2, %cst {dimension_numbers = #tpu.dot_dimension_numbers<[1], [0], [0], [1], [0, 0, 1, 1], [], []>} : vector<8x16xf32>, vector<16x256xf32>, vector<8x256xf32> -> vector<8x256xf32>
    %c0_4 = arith.constant 0 : index
    %c0_5 = arith.constant 0 : index
    %4 = vector.load %arg4[%c0_4, %c0_5] : memref<8x1xf32, #tpu.memory_space<vmem>>, vector<8x1xf32>
    %5 = vector.broadcast %4 : vector<8x1xf32> to vector<8x256xf32>
    %6 = arith.addf %3, %5 : vector<8x256xf32>
    %cst_6 = arith.constant 0.000000e+00 : f32
    %7 = vector.broadcast %cst_6 : f32 to vector<8x256xf32>
    %8 = arith.maximumf %6, %7 : vector<8x256xf32>
    %9 = vector.shape_cast %8 : vector<8x256xf32> to vector<1x8x256xf32>
    %c0_7 = arith.constant 0 : index
    %c0_8 = arith.constant 0 : index
    %c0_9 = arith.constant 0 : index
    %10 = vector.load %arg5[%c0_7, %c0_8, %c0_9] : memref<1x8x256xf32, #tpu.memory_space<vmem>>, vector<1x8x256xf32>
    tpu.vector_store %arg5[%c0_7, %c0_8, %c0_9], %9 {strides = array<i32>} : memref<1x8x256xf32, #tpu.memory_space<vmem>>, vector<1x8x256xf32>,
    return
  }
  func.func @transform_0(%arg0: i32, %arg1: i32) -> (i32, i32, i32) {
    %c0_i32 = arith.constant 0 : i32
    %c0_i32_0 = arith.constant 0 : i32
    return %arg0, %c0_i32, %arg1 : i32, i32, i32
  }
  func.func @transform_1(%arg0: i32, %arg1: i32) -> (i32, i32) {
    %c0_i32 = arith.constant 0 : i32
    %c0_i32_0 = arith.constant 0 : i32
    %c0_i32_1 = arith.constant 0 : i32
    return %c0_i32, %c0_i32_0 : i32, i32
  }
  func.func @transform_2(%arg0: i32, %arg1: i32) -> (i32, i32) {
    %c0_i32 = arith.constant 0 : i32
    %c0_i32_0 = arith.constant 0 : i32
    %c0_i32_1 = arith.constant 0 : i32
    return %c0_i32, %c0_i32_0 : i32, i32
  }
  func.func @transform_3(%arg0: i32, %arg1: i32) -> (i32, i32, i32) {
    %c0_i32 = arith.constant 0 : i32
    %c0_i32_0 = arith.constant 0 : i32
    return %arg0, %c0_i32, %arg1 : i32, i32, i32
  }
}

</mosaic_0001>

<bundles_post_ra>
// kernel: reverse.0
= control target key start
LH: loop header
LB: loop body
LE: loop exit
PB: predicated region body
PF: predicated region fallthrough
CT: control target
= control target key end

     0   :  { %v71_v3 = vlaneseq  ;;  %v64_v9 = vld [vmem:[#allocation0 + $0x7] ss:$-1 sm:$0xff]  ;;  %v78_v12 = vld [vmem:[#allocation0 + $0x17] ss:$-1 sm:$0xff]  ;;  %s329_s0 = inlined_call_operand.vmem [shape: f32[2,4,16,7], index: 0, kind: input, shape index: {}]   ;;  %s330_s1 = inlined_call_operand.vmem [shape: f32[2,4,16,7], index: 1, kind: output, shape index: {}]  }
   0x1   :  { %v44_v0 = vld [vmem:[%s329_s0] sm:$0xff]  ;;  %v46_v1 = vld [vmem:[%s329_s0 + $0x8] sm:$0xff]  ;;  %v48_v2 = vld [vmem:[%s329_s0 + $0x10] sm:$0xff]  ;;  %v65_v10 = vrot.slane %v64_v9, 1  ;;  %v79_v14 = vrot.slane %v78_v12, 1 }
   0x2   :  { %45 = vst [vmem:[#allocation0 + $0x8] sm:$0xff] %v44_v0  ;;  %47 = vst [vmem:[#allocation0 + $0x18] sm:$0xff] %v46_v1  ;;  %v50_v4 = vld [vmem:[%s329_s0 + $0x18] sm:$0xff]  ;;  %v52_v5 = vld [vmem:[%s329_s0 + $0x20] sm:$0xff]  ;;  %v72_v11 = vshrl.u32 %v71_v3, 7 }
   0x3   :  { %49 = vst [vmem:[#allocation0 + $0x28] sm:$0xff] %v48_v2  ;;  %v54_v6 = vld [vmem:[%s329_s0 + $0x28] sm:$0xff]  ;;  %51 = vst [vmem:[#allocation0 + $0x38] sm:$0xff] %v50_v4  ;;  %v56_v7 = vld [vmem:[%s329_s0 + $0x30] sm:$0xff] }
   0x4   :  { %53 = vst [vmem:[#allocation0 + $0x48] sm:$0xff] %v52_v5  ;;  %55 = vst [vmem:[#allocation0 + $0x58] sm:$0xff] %v54_v6  ;;  %v58_v8 = vld [vmem:[%s329_s0 + $0x38] sm:$0xff]  ;;  %v92_v13 = vld [vmem:[#allocation0 + $0x27] ss:$-1 sm:$0xff]  ;;  %vm73_vm0 = vcmp.lt.s32.totalorder %v72_v11, 7 }
   0x5   :  { %57 = vst [vmem:[#allocation0 + $0x68] sm:$0xff] %v56_v7  ;;  %59 = vst [vmem:[#allocation0 + $0x78] sm:$0xff] %v58_v8  ;;  %v93_v15 = vrot.slane %v92_v13, 1  ;;  %v106_v16 = vld [vmem:[#allocation0 + $0x37] ss:$-1 sm:$0xff] }
   0x6   :  { %66 = vst [vmem:[#allocation1] sm:$0xff] %v65_v10  ;;  %v107_v17 = vrot.slane %v106_v16, 1  ;;  %v120_v18 = vld [vmem:[#allocation0 + $0x47] ss:$-1 sm:$0xff]  ;;  %v134_v19 = vld [vmem:[#allocation0 + $0x57] ss:$-1 sm:$0xff] }
   0x7   :  { %80 = vst [vmem:[#allocation1 + $0x8] sm:$0xff] %v79_v14  ;;  %94 = vst [vmem:[#allocation1 + $0x10] sm:$0xff] %v93_v15  ;;  %v121_v20 = vrot.slane %v120_v18, 1  ;;  %v135_v21 = vrot.slane %v134_v19, 1  ;;  %v148_v22 = vld [vmem:[#allocation0 + $0x67] ss:$-1 sm:$0xff] }
   0x8   :  { %v162_v23 = vld [vmem:[#allocation0 + $0x77] ss:$-1 sm:$0xff]  ;;  %108 = vst [vmem:[#allocation1 + $0x18] sm:$0xff] %v107_v17  ;;  %v149_v24 = vrot.slane %v148_v22, 1 }
   0x9   :  { %v163_v25 = vrot.slane %v162_v23, 1  ;;  %v69_v26 = vld [vmem:[#allocation0 + $0xf] ss:$-1 sm:$0xff]  ;;  %v83_v27 = vld [vmem:[#allocation0 + $0x1f] ss:$-1 sm:$0xff]  ;;  %122 = vst [vmem:[#allocation1 + $0x20] sm:$0xff] %v121_v20 }
   0xa   :  { %v97_v28 = vld [vmem:[#allocation0 + $0x2f] ss:$-1 sm:$0xff]  ;;  %136 = vst [vmem:[#allocation1 + $0x28] sm:$0xff] %v135_v21  ;;  %v70_v29 = vrot.slane %v69_v26, 1  ;;  %v84_v30 = vrot.slane %v83_v27, 1  ;;  %150 = vst [vmem:[#allocation1 + $0x30] sm:$0xff] %v149_v24 }
   0xb   :  { %v98_v31 = vrot.slane %v97_v28, 1  ;;  %v111_v32 = vld [vmem:[#allocation0 + $0x3f] ss:$-1 sm:$0xff]  ;;  %164 = vst [vmem:[#allocation1 + $0x38] sm:$0xff] %v163_v25  ;;  %v125_v34 = vld [vmem:[#allocation0 + $0x4f] ss:$-1 sm:$0xff] }
   0xc   :  { %v112_v33 = vrot.slane %v111_v32, 1  ;;  %v139_v35 = vld [vmem:[#allocation0 + $0x5f] ss:$-1 sm:$0xff]  ;;  %74 = vst.msk [vmem:[#allocation1] sm:$0xff] %vm73_vm0, %v70_v29  ;;  %88 = vst.msk [vmem:[#allocation1 + $0x8] sm:$0xff] %vm73_vm0, %v84_v30  ;;  %v126_v36 = vrot.slane %v125_v34, 1 }
   0xd   :  { %102 = vst.msk [vmem:[#allocation1 + $0x10] sm:$0xff] %vm73_vm0, %v98_v31  ;;  %v140_v37 = vrot.slane %v139_v35, 1  ;;  %v153_v38 = vld [vmem:[#allocation0 + $0x6f] ss:$-1 sm:$0xff]  ;;  %v167_v39 = vld [vmem:[#allocation0 + $0x7f] ss:$-1 sm:$0xff] }
   0xe   :  { %116 = vst.msk [vmem:[#allocation1 + $0x18] sm:$0xff] %vm73_vm0, %v112_v33  ;;  %v154_v40 = vrot.slane %v153_v38, 1  ;;  %v168_v41 = vrot.slane %v167_v39, 1  ;;  %130 = vst.msk [vmem:[#allocation1 + $0x20] sm:$0xff] %vm73_vm0, %v126_v36 }
   0xf   :  { %144 = vst.msk [vmem:[#allocation1 + $0x28] sm:$0xff] %vm73_vm0, %v140_v37 }
  0x10   :  { %158 = vst.msk [vmem:[#allocation1 + $0x30] sm:$0xff] %vm73_vm0, %v154_v40  ;;  %172 = vst.msk [vmem:[#allocation1 + $0x38] sm:$0xff] %vm73_vm0, %v168_v41 }
  0x13   :  { %v214_v42 = vld [vmem:[#allocation1] sm:$0xff]  ;;  %v216_v43 = vld [vmem:[#allocation1 + $0x8] sm:$0xff] }
  0x14   :  { %v218_v44 = vld [vmem:[#allocation1 + $0x10] sm:$0xff]  ;;  %215 = vst [vmem:[%s330_s1] sm:$0xff] %v214_v42  ;;  %217 = vst [vmem:[%s330_s1 + $0x8] sm:$0xff] %v216_v43 }
  0x15   :  { %219 = vst [vmem:[%s330_s1 + $0x10] sm:$0xff] %v218_v44  ;;  %v220_v45 = vld [vmem:[#allocation1 + $0x18] sm:$0xff]  ;;  %v222_v46 = vld [vmem:[#allocation1 + $0x20] sm:$0xff] }
  0x16   :  { %221 = vst [vmem:[%s330_s1 + $0x18] sm:$0xff] %v220_v45  ;;  %v224_v47 = vld [vmem:[#allocation1 + $0x28] sm:$0xff]  ;;  %223 = vst [vmem:[%s330_s1 + $0x20] sm:$0xff] %v222_v46 }
  0x17   :  { %225 = vst [vmem:[%s330_s1 + $0x28] sm:$0xff] %v224_v47  ;;  %v226_v48 = vld [vmem:[#allocation1 + $0x30] sm:$0xff]  ;;  %v228_v49 = vld [vmem:[#allocation1 + $0x38] sm:$0xff] }
  0x18   :  { %227 = vst [vmem:[%s330_s1 + $0x30] sm:$0xff] %v226_v48  ;;  %229 = vst [vmem:[%s330_s1 + $0x38] sm:$0xff] %v228_v49 }

// kernel: fourier_unit_forward.2
= control target key start
LH: loop header
LB: loop body
LE: loop exit
PB: predicated region body
PF: predicated region fallthrough
CT: control target
= control target key end

     0   :  { %s731_s12 = smov 0   ;;  %s733_s13 = smov 0   ;;  %s774_s0 = inlined_call_operand.vmem [shape: f32[2,16,256], index: 0, kind: input, shape index: {}]   ;;  %s775_s1 = inlined_call_operand.vmem [shape: f32[8,16], index: 1, kind: input, shape index: {}]   ;;  %s776_s2 = inlined_call_operand.vmem [shape: f32[2,8,128], index: 2, kind: output, shape index: {0}]   ;;  %s777_s3 = inlined_call_operand.vmem [shape: f32[2,8,128], index: 3, kind: output, shape index: {1}]  }
   0x1   :  { %s735_s14 = smov 0  }
   0x2 LB: > { %s26_s15 = sadd.s32 1, %s703_s13  ;;  %p544_p0 = scmp.ge.s32.totalorder %s707_s14, 1  ;;  %s707_s14 = sphi %s735_s14, %s14_s14   ;;  %s703_s13 = sphi %s733_s13, %s779_s13   ;;  %s699_s12 = sphi %s731_s12, %s778_s12  }
   0x3   : > { %p28_p1 = scmp.ge.s32.totalorder %s26_s15, 2  ;;  %p159_p2 = scmp.lt.s32.totalorder %s707_s14, 3 }
   0x5   : > { %s781_s15 = smov (%p28_p1, %s26_s15), 0  ;;  %p160_p3 = pnand %p544_p0, %p159_p2 }
   0x6   : > { %p191_p4 = scmp.lt.s32.totalorder (!%p160_p3), %s699_s12, 1  ;;  %v709_v0 = vmov (!%p160_p3), 0.0   ;;  %v710_v1 = vmov (!%p160_p3), 1.0|1.0   ;;  %v214_v8 = vld [vmem:[%s775_s1] sm:$0xff] (!%p160_p3)  ;;  %vm219_vm0 = vcmask (!%p160_p3), 130048  }
   0x7   : > { %163 = sbr.rel (%p160_p3) target bundleno = 456 (0x1c8), region = 28  ;;  %287 = vmatprep.mubr.f32.mxu0 (!%p160_p3), %v709_v0  ;;  %627 = vmatprep.subr.bf16.mxu1 (!%p160_p3), %v710_v1 }
   0x8   : > { %628 = vmatpush3.bf16.msra.mxu1 (!%p160_p3), %v710_v1 }
   0x9   : > { %629 = vmatprep.subr.bf16.mxu1 (!%p160_p3), %v710_v1 }
   0xc   : > { %630 = vmatpush3.bf16.msra.mxu1 (!%p160_p3), %v710_v1 }
   0xd   : > { %631 = vmatprep.subr.bf16.mxu1 (!%p160_p3), %v710_v1 }
   0xe   : > { %s783_s12 = smov (!%p191_p4, %s699_s12), 1 }
   0xf   : > { %s552_s16 = sshll.u32 %s783_s12, 5  ;;  %s547_s22 = sshll.u32 %s783_s12, 3 }
  0x10   : > { %s198_s19 = scalar_lea.vmem %s774_s0, %s552_s16  ;;  %632 = vmatpush3.bf16.msra.mxu1 %v710_v1  ;;  %s203_s25 = scalar_lea.vmem %s776_s2, %s547_s22 }
  0x11   : > { %v216_v2 = vld [vmem:[%s198_s19 + $0x8] sm:$0xff]  ;;  %v218_v3 = vld [vmem:[%s198_s19 + $0x18] sm:$0xff]  ;;  %v215_v4 = vld [vmem:[%s198_s19] sm:$0xff]  ;;  %633 = vmatprep.subr.bf16.mxu1 %v710_v1  ;;  %s207_s28 = scalar_lea.vmem %s777_s3, %s547_s22 }
  0x12   : > { %v623_v5 = vpack.c.bf16 %v218_v3, %v216_v2  ;;  %v217_v6 = vld [vmem:[%s198_s19 + $0x10] sm:$0xff] }
  0x13   : > { %v625_v7 = vpack.c.bf16 %v217_v6, %v215_v4 }
  0x14   : > { %624 = vmatprep.subr.bf16.mxu0 %v623_v5  ;;  %634 = vmatpush3.bf16.msra.mxu1 %v710_v1 }
  0x15   : > { %626 = vmatpush1.bf16.msra.mxu0 %v625_v7  ;;  %635 = vmatprep.subr.bf16.mxu1 %v710_v1 }
  0x16   : > { %643 = vmatprep.subr.bf16.mxu0 %v710_v1 }
  0x18   : > { %549 = vmatmul.mubr.msk.f32.vlgmr.msra.gmra.mrb[0].mxu0 %vm219_vm0, %v214_v8  ;;  %636 = vmatpush3.bf16.msra.mxu1 %v710_v1 }
  0x19   : > { %644 = vmatpush3.bf16.msra.mxu0 %v710_v1  ;;  %637 = vmatprep.subr.bf16.mxu1 %v710_v1 }
  0x1a   : > { %645 = vmatprep.subr.bf16.mxu0 %v710_v1 }
  0x1c   : > { %638 = vmatpush3.bf16.msra.mxu1 %v710_v1 }
  0x1d   : > { %646 = vmatpush3.bf16.msra.mxu0 %v710_v1  ;;  %639 = vmatprep.subr.bf16.mxu1 %v710_v1 }
  0x1e   : > { %647 = vmatprep.subr.bf16.mxu0 %v710_v1 }
  0x20   : > { %640 = vmatpush3.bf16.msra.mxu1 %v710_v1 }
  0x21   : > { %648 = vmatpush3.bf16.msra.mxu0 %v710_v1  ;;  %641 = vmatprep.subr.bf16.mxu1 %v710_v1 }
  0x22   : > { %649 = vmatprep.subr.bf16.mxu0 %v710_v1 }
  0x24   : > { %642 = vmatpush3.bf16.msra.mxu1 %v710_v1 }
  0x25   : > { %650 = vmatpush3.bf16.msra.mxu0 %v710_v1 }
  0x26   : > { %651 = vmatprep.subr.bf16.mxu0 %v710_v1 }
  0x29   : > { %652 = vmatpush3.bf16.msra.mxu0 %v710_v1 }
  0x2a   : > { %653 = vmatprep.subr.bf16.mxu0 %v710_v1 }
  0x2d   : > { %654 = vmatpush3.bf16.msra.mxu0 %v710_v1 }
  0x2e   : > { %655 = vmatprep.subr.bf16.mxu0 %v710_v1 }
  0x31   : > { %656 = vmatpush3.bf16.msra.mxu0 %v710_v1 }
  0x32   : > { %657 = vmatprep.subr.bf16.mxu0 %v710_v1 }
  0x35   : > { %658 = vmatpush3.bf16.msra.mxu0 %v710_v1 }
  0xeb   : > { %v289_v9 = vpop.f32.mrb[0].mxu0 }
  0xec   : > { %v291_v10 = vpop.f32.mrb[1].mxu0  ;;  %v368_v12 = vmul.f32 %v289_v9, %v289_v9 }
  0xed   : > { %v369_v11 = vmul.f32 %v291_v10, %v291_v10  ;;  %359 = vmatprep.mubr.f32.mxu1 %v291_v10 }
  0xee   : > { %360 = vmatmul.mubr.f32.vlgmr.msra.gmra.mrb[0].mxu1 %v289_v9 }
  0xef   : > { %434 = vmatprep.mubr.f32.mxu0 %v369_v11 }
  0xf0   : > { %435 = vmatmul.mubr.f32.vlgmr.msra.gmra.mrb[2].mxu0 %v368_v12 }
 0x1c1   : > { %v585_v13 = vpop.f32.mrb[0].mxu1 }
 0x1c2   : > { %v586_v14 = vpop.f32.mrb[1].mxu1 }
 0x1c3   : > { %v587_v15 = vadd.f32 %v586_v14, %v585_v13  ;;  %v620_v16 = vpop.f32.mrb[2].mxu0 }
 0x1c4   : > { %v621_v17 = vpop.f32.mrb[3].mxu0 }
 0x1c5   : > { %v622_v18 = vadd.f32 %v621_v17, %v620_v16  ;;  %366 = vst [vmem:[%s203_s25] sm:$0xff] %v587_v15 }
 0x1c7   : > { %441 = vst [vmem:[%s207_s28] sm:$0xff] %v622_v18 }
 0x1c8 PF: > { %s14_s14 = sadd.s32 1, %s707_s14   ;;  %s778_s12 = smov %s703_s13 }
 0x1c9   : > { %p11_p5 = scmp.ge.s32.totalorder %s14_s14, 4   ;;  %s779_s13 = smov %s781_s15 }
 0x1cb   :  { %13 = sbr.rel (!%p11_p5) target bundleno = 2 (0x2), region = 74 }

// kernel: fourier_unit_forward.3
= control target key start
LH: loop header
LB: loop body
LE: loop exit
PB: predicated region body
PF: predicated region fallthrough
CT: control target
= control target key end

     0   :  { %s478_s12 = smov 0   ;;  %s480_s13 = smov 0   ;;  %s517_s0 = inlined_call_operand.vmem [shape: f32[2,16,256], index: 0, kind: input, shape index: {}]   ;;  %s518_s1 = inlined_call_operand.vmem [shape: f32[8,16], index: 1, kind: input, shape index: {}]   ;;  %s519_s2 = inlined_call_operand.vmem [shape: f32[8,1], index: 2, kind: input, shape index: {}]   ;;  %s520_s3 = inlined_call_operand.vmem [shape: f32[2,8,256], index: 3, kind: output, shape index: {}]  }
   0x1   :  { %s482_s14 = smov 0  }
   0x2 LB: > { %s25_s15 = sadd.s32 1, %s450_s13  ;;  %p391_p0 = scmp.ge.s32.totalorder %s454_s14, 1  ;;  %s454_s14 = sphi %s482_s14, %s13_s14   ;;  %s450_s13 = sphi %s480_s13, %s522_s13   ;;  %s446_s12 = sphi %s478_s12, %s521_s12  }
   0x3   : > { %p27_p1 = scmp.ge.s32.totalorder %s25_s15, 2  ;;  %p158_p2 = scmp.lt.s32.totalorder %s454_s14, 3 }
   0x5   : > { %s524_s15 = smov (%p27_p1, %s25_s15), 0  ;;  %p159_p3 = pnand %p391_p0, %p158_p2 }
   0x6   : > { %p191_p4 = scmp.lt.s32.totalorder (!%p159_p3), %s446_s12, 1  ;;  %v215_v0 = vld [vmem:[%s519_s2] sm:$0xff] (!%p159_p3)  ;;  %v456_v1 = vmov (!%p159_p3), 0.0   ;;  %v457_v2 = vmov (!%p159_p3), 0   ;;  %vm221_vm0 = vcmask (!%p159_p3), 130048  }
   0x7   : > { %162 = sbr.rel (%p159_p3) target bundleno = 242 (0xf2), region = 32  ;;  %289 = vmatprep.mubr.f32.mxu0 (!%p159_p3), %v456_v1  ;;  %431 = vset.pattern.permute.xlu0 (!%p159_p3), %v457_v2  ;;  %v210_v9 = vld [vmem:[%s518_s1] sm:$0xff] (!%p159_p3) }
   0x8   : > { %218 = vperm.xlu0 (!%p159_p3), %431, %v215_v0  }
   0xe   : > { %s526_s12 = smov (!%p191_p4, %s446_s12), 1 }
   0xf   : > { %s399_s18 = sshll.u32 %s526_s12, 5  ;;  %s400_s24 = sshll.u32 %s526_s12, 4 }
  0x10   : > { %s198_s21 = scalar_lea.vmem %s517_s0, %s399_s18  ;;  %s208_s27 = scalar_lea.vmem %s520_s3, %s400_s24 }
  0x11   : > { %v212_v3 = vld [vmem:[%s198_s21 + $0x8] sm:$0xff]  ;;  %v214_v4 = vld [vmem:[%s198_s21 + $0x18] sm:$0xff]  ;;  %v211_v5 = vld [vmem:[%s198_s21] sm:$0xff] }
  0x12   : > { %v401_v6 = vpack.c.bf16 %v214_v4, %v212_v3  ;;  %v213_v7 = vld [vmem:[%s198_s21 + $0x10] sm:$0xff] }
  0x13   : > { %v403_v8 = vpack.c.bf16 %v213_v7, %v211_v5 }
  0x14   : > { %402 = vmatprep.subr.bf16.mxu0 %v401_v6 }
  0x15   : > { %404 = vmatpush1.bf16.msra.mxu0 %v403_v8 }
  0x18   : > { %396 = vmatmul.mubr.msk.f32.vlgmr.msra.gmra.mrb[0].mxu0 %vm221_vm0, %v210_v9 }
  0x87   : > { %v219_v10 = vpop.permute.xlu0 %218 }
  0xeb   : > { %v291_v11 = vpop.f32.mrb[0].mxu0 }
  0xec   : > { %v292_v12 = vadd.f32 %v291_v11, %v219_v10  ;;  %v293_v13 = vpop.f32.mrb[1].mxu0 }
  0xed   : > { %v294_v14 = vadd.f32 %v293_v13, %v219_v10 }
  0xee   : > { %v296_v15 = vmax.f32 %v292_v12, 0.0 }
  0xef   : > { %v297_v16 = vmax.f32 %v294_v14, 0.0 }
  0xf0   : > { %298 = vst [vmem:[%s208_s27] sm:$0xff] %v296_v15 }
  0xf1   : > { %299 = vst [vmem:[%s208_s27 + $0x8] sm:$0xff] %v297_v16 }
  0xf2 PF: > { %s13_s14 = sadd.s32 1, %s454_s14   ;;  %s521_s12 = smov %s450_s13 }
  0xf3   : > { %p10_p5 = scmp.ge.s32.totalorder %s13_s14, 4   ;;  %s522_s13 = smov %s524_s15 }
  0xf5   :  { %12 = sbr.rel (!%p10_p5) target bundleno = 2 (0x2), region = 62 }

</bundles_post_ra>
